<compile_context>
chip_gen: v7x
topology: tpu7x:2x2x1
jax: 0.10.0
libtpu: 0.0.40
codegen_flags: <defaults>
</compile_context>

<pallas_src>
import functools
import math

import jax
import jax.numpy as jnp
from jax.experimental import pallas as pl
from jax.experimental.pallas import tpu as pltpu


# ----------------------------------------------------------------------------
# Kernel
# ----------------------------------------------------------------------------
def _msa_block_kernel(
    x_ref,            # (Bt, S, E)  f32
    g_ref, beta_ref,  # (1, E)      f32   layer-norm affine
    wqkv_ref,         # (E, 3E)     bf16  (pre-transposed; q-scale folded in)
    bqkv_ref,         # (1, 3E)     f32   (q-scale folded in)
    wo_ref,           # (E, E)      bf16  (pre-transposed out_proj.weight)
    bo_ref,           # (1, E)      f32
    o_ref,            # (Bt, S, E)  f32
    *,
    num_heads: int,
    group_size: int,
):
    eps = 1e-5
    x = x_ref[...]                                  # (Bt, S, E) f32
    Bt, S, E = x.shape
    Dh = E // num_heads
    G = group_size
    Dg = G * Dh
    num_groups = num_heads // G

    # ---- LayerNorm (f32 elementwise, rsqrt on the EUP) ----
    mu = jnp.mean(x, axis=-1, keepdims=True)
    var = jnp.mean((x - mu) ** 2, axis=-1, keepdims=True)
    xn = (x - mu) * jax.lax.rsqrt(var + eps)
    xn = xn * g_ref[...] + beta_ref[...]

    # ---- QKV projection: bf16 operands, f32 accumulation on the MXU ----
    qkv = jax.lax.dot_general(
        xn.astype(jnp.bfloat16), wqkv_ref[...],
        dimension_numbers=(((2,), (0,)), ((), ())),
        preferred_element_type=jnp.float32,
    ) + bqkv_ref[...]                               # (Bt, S, 3E) f32
    # Cast once: every q/k/v slice below comes from the bf16 tensor, halving
    # the largest live intermediate and removing per-head VALU cast passes.
    qkv = qkv.astype(jnp.bfloat16)

    q = qkv[..., 0 * E:1 * E]                       # 1/sqrt(Dh) already folded in
    k = qkv[..., 1 * E:2 * E]
    v = qkv[..., 2 * E:3 * E]
    wo = wo_ref[...]                                # (E, E) bf16, loaded once

    # ---- Attention in head groups of G heads (G*Dh lanes per group) ----
    # Group slices are lane-aligned for real ViT dims (G*Dh multiple of 128),
    # and the folded output projection contracts over G*Dh, filling the MXU
    # contraction depth (vs. a single head's Dh).  num_groups is small (<= 6
    # for typical ViT configs) so a static loop keeps live ranges bounded.
    acc = jnp.zeros((Bt, S, E), jnp.float32)
    for g in range(num_groups):
        gsl = slice(g * Dg, (g + 1) * Dg)
        qg = q[..., gsl]                            # (Bt, S, Dg) bf16
        kg = k[..., gsl]
        vg = v[..., gsl]

        ctx_parts = []
        for hh in range(G):
            hsl = slice(hh * Dh, (hh + 1) * Dh)
            qh = qg[..., hsl]                       # (Bt, S, Dh) bf16
            kh = kg[..., hsl]
            vh = vg[..., hsl]

            # q . k^T as a direct contraction (no transposed operand).
            s = jnp.einsum("bqd,bkd->bqk", qh, kh,
                           preferred_element_type=jnp.float32)   # (Bt, S, S) f32
            s = s - jnp.max(s, axis=-1, keepdims=True)
            p = jnp.exp(s)
            # EUP approx reciprocal: error is below the downstream bf16 rounding.
            p = p * pl.reciprocal(jnp.sum(p, axis=-1, keepdims=True), approx=True)

            ctx_parts.append(
                jnp.einsum("bqk,bkd->bqd", p.astype(jnp.bfloat16), vh,
                           preferred_element_type=jnp.float32))  # (Bt, S, Dh)

        ctx_g = jnp.concatenate(ctx_parts, axis=-1).astype(jnp.bfloat16)  # (Bt,S,Dg)

        # Folded output projection: one dot per group, contraction depth G*Dh.
        acc = acc + jax.lax.dot_general(
            ctx_g, wo[gsl, :],
            dimension_numbers=(((2,), (0,)), ((), ())),
            preferred_element_type=jnp.float32)

    o_ref[...] = (acc + bo_ref[...]).astype(o_ref.dtype)


# ----------------------------------------------------------------------------
# Wrapper / tiling heuristics
# ----------------------------------------------------------------------------
def _pick_group_size(num_heads, head_dim):
    """Largest divisor of num_heads whose group width (G*Dh) is <= 256 lanes."""
    best = 1
    for g in range(1, num_heads + 1):
        if num_heads % g == 0 and g * head_dim <= 256:
            best = g
    return best


def _step_vmem_bytes(bb, S, E, head_dim, group_size):
    """Rough per-grid-step VMEM working set (bytes) for a batch tile of bb rows."""
    Dg = group_size * head_dim
    io = 2 * 2 * bb * S * E * 4                    # x + o tiles, double-buffered f32
    inter = bb * S * (E * 4        # x / xn f32
                      + E * 2      # xn bf16
                      + 3 * E * 4  # qkv f32 (transient)
                      + 3 * E * 2  # qkv bf16
                      + E * 4      # acc f32
                      + Dg * 4     # group ctx f32
                      + Dg * 2)    # group ctx bf16
    inter += 2 * bb * S * S * 4                    # per-head scores / probs f32
    return io + inter


def _weight_vmem_bytes(E):
    # bf16 projection weights + f32 biases / LN affine (single-buffered).
    return (3 * E * E + E * E) * 2 + (3 * E + 3 * E) * 4


def msa_block(x, params, num_heads, *, block_b=None):
    """x: (B, S, E) f32.  params in PyTorch layout:
       gamma/beta (E,), wqkv (3E, E), bqkv (3E,), wo (E, E), bo (E,)."""
    B, S, E = x.shape
    assert E % num_heads == 0
    Dh = E // num_heads
    G = _pick_group_size(num_heads, Dh)

    # --- per-generation VMEM budgets ---
    try:
        info = pltpu.get_tpu_info()
        vmem_cap = int(getattr(info, "vmem_capacity_bytes", 64 * 1024 * 1024))
    except Exception:
        vmem_cap = 64 * 1024 * 1024                # conservative (v7x-class)
    if vmem_cap <= 64 * 1024 * 1024:               # v7x: 64 MiB physical VMEM
        ws_budget, vmem_cap_limit = 12 * 1024 * 1024, 48 * 1024 * 1024
    else:                                          # v5e / v6e: 128 MiB physical
        ws_budget, vmem_cap_limit = 24 * 1024 * 1024, 96 * 1024 * 1024

    # --- VMEM-budget-driven batch tile ---
    if block_b is None:
        divisors = [d for d in range(1, B + 1) if B % d == 0]
        fitting = [d for d in divisors
                   if _step_vmem_bytes(d, S, E, Dh, G) <= ws_budget] or [1]

        def _best(pred):
            ok = [d for d in fitting if pred(d)]
            return max(ok) if ok else None

        block_b = (_best(lambda d: B // d >= 4 and (B // d) % 2 == 0)  # >=2 steps/core (v7x)
                   or _best(lambda d: B // d >= 4)
                   or _best(lambda d: B // d >= 2)
                   or max(fitting))
    assert B % block_b == 0
    nb = B // block_b

    vmem_limit = int(1.4 * (_step_vmem_bytes(block_b, S, E, Dh, G)
                            + _weight_vmem_bytes(E)))
    vmem_limit = max(16 * 1024 * 1024, min(vmem_limit, vmem_cap_limit))

    # --- weight prep: transpose, fold q-scale, cast matmul operands to bf16 ---
    scale = 1.0 / math.sqrt(Dh)
    g = params["gamma"].astype(jnp.float32).reshape(1, E)
    beta = params["beta"].astype(jnp.float32).reshape(1, E)
    qscale = jnp.concatenate([jnp.full((E,), scale, jnp.float32),
                              jnp.ones((2 * E,), jnp.float32)])
    wqkv_t = (params["wqkv"].T.astype(jnp.float32) * qscale[None, :]
              ).astype(jnp.bfloat16)                              # (E, 3E)
    bqkv = (params["bqkv"].astype(jnp.float32) * qscale).reshape(1, 3 * E)
    wo_t = params["wo"].T.astype(jnp.bfloat16)                    # (E, E)
    bo = params["bo"].astype(jnp.float32).reshape(1, E)

    def const(shape):
        idx = lambda b: tuple(0 for _ in shape)
        try:
            # Constant-index blocks: single-buffer to halve their VMEM footprint.
            return pl.BlockSpec(shape, idx, pipeline_mode=pl.Buffered(1))
        except Exception:
            return pl.BlockSpec(shape, idx)

    flops = (2 * B * S * E * 3 * E            # qkv projection
             + 4 * B * S * S * E              # scores + p@v over all heads
             + 2 * B * S * E * E)             # folded out-projection
    transcendentals = B * num_heads * S * S + B * S
    bytes_accessed = (2 * B * S * E * 4
                      + (3 * E * E + E * E) * 2
                      + (3 * E + 3 * E) * 4)

    kernel = functools.partial(_msa_block_kernel,
                               num_heads=num_heads, group_size=G)
    return pl.pallas_call(
        kernel,
        out_shape=jax.ShapeDtypeStruct((B, S, E), jnp.float32),
        grid=(nb,),
        in_specs=[
            pl.BlockSpec((block_b, S, E), lambda b: (b, 0, 0)),   # x
            const((1, E)), const((1, E)),                         # LN affine
            const((E, 3 * E)), const((1, 3 * E)),                 # in_proj
            const((E, E)), const((1, E)),                         # out_proj
        ],
        out_specs=pl.BlockSpec((block_b, S, E), lambda b: (b, 0, 0)),
        compiler_params=pltpu.CompilerParams(
            dimension_semantics=("parallel",),
            vmem_limit_bytes=vmem_limit,
        ),
        cost_estimate=pl.CostEstimate(
            flops=flops,
            transcendentals=transcendentals,
            bytes_accessed=bytes_accessed,
        ),
    )(x, g, beta, wqkv_t, bqkv, wo_t, bo)


# ----------------------------------------------------------------------------
# Pure-JAX reference (mirrors the PyTorch module's forward)
# ----------------------------------------------------------------------------
def _reference(x, p, num_heads):
    eps = 1e-5
    B, S, E = x.shape
    Dh = E // num_heads
    mu = jnp.mean(x, axis=-1, keepdims=True)
    var = jnp.mean((x - mu) ** 2, axis=-1, keepdims=True)
    xn = (x - mu) / jnp.sqrt(var + eps) * p["gamma"] + p["beta"]
    qkv = xn @ p["wqkv"].T + p["bqkv"]
    q, k, v = jnp.split(qkv, 3, axis=-1)
    q = q.reshape(B, S, num_heads, Dh).transpose(0, 2, 1, 3) / math.sqrt(Dh)
    k = k.reshape(B, S, num_heads, Dh).transpose(0, 2, 1, 3)
    v = v.reshape(B, S, num_heads, Dh).transpose(0, 2, 1, 3)
    s = jnp.einsum("bhqd,bhkd->bhqk", q, k)
    a = jax.nn.softmax(s, axis=-1)
    o = jnp.einsum("bhqk,bhkd->bhqd", a, v).transpose(0, 2, 1, 3).reshape(B, S, E)
    return o @ p["wo"].T + p["bo"]


if __name__ == "__main__":
    def make_params(key, E):
        k0, k1, k2, k3, k4, k5 = jax.random.split(key, 6)
        return {
            "gamma": 1.0 + 0.1 * jax.random.normal(k0, (E,), jnp.float32),
            "beta": 0.1 * jax.random.normal(k1, (E,), jnp.float32),
            "wqkv": 0.02 * jax.random.normal(k2, (3 * E, E), jnp.float32),
            "bqkv": 0.02 * jax.random.normal(k3, (3 * E,), jnp.float32),
            "wo": 0.02 * jax.random.normal(k4, (E, E), jnp.float32),
            "bo": 0.02 * jax.random.normal(k5, (E,), jnp.float32),
        }

    key = jax.random.PRNGKey(0)
    kp, kx, kp2, kx2 = jax.random.split(key, 4)

    # Main test: batch=2, seq=8, embed=32, heads=4.
    B, S, E, H = 2, 8, 32, 4
    params = make_params(kp, E)
    x = jax.random.normal(kx, (B, S, E), jnp.float32)
    out = jax.block_until_ready(msa_block(x, params, num_heads=H))
    ref = _reference(x, params, H)
    assert out.shape == (B, S, E)
    max_err = float(jnp.max(jnp.abs(out - ref)))
    # bf16 matmul operands with f32 accumulation -> loosened tolerance.
    assert jnp.allclose(out, ref, rtol=2e-2, atol=2e-3), max_err

    # Extra check at a sequence length that is not a multiple of 8 (exercises
    # padded-lane masking of the LayerNorm / softmax reductions).
    B2, S2, E2, H2 = 2, 13, 32, 4
    params2 = make_params(kp2, E2)
    x2 = jax.random.normal(kx2, (B2, S2, E2), jnp.float32)
    out2 = jax.block_until_ready(msa_block(x2, params2, num_heads=H2))
    ref2 = _reference(x2, params2, H2)
    max_err2 = float(jnp.max(jnp.abs(out2 - ref2)))
    assert jnp.allclose(out2, ref2, rtol=2e-2, atol=2e-3), max_err2

    print("KERNEL_OK")
</pallas_src>

<mosaic_0001>
module attributes {stable_mosaic.version = 11 : i64} {
  func.func @_msa_block_kernel(%arg0: i32, %arg1: memref<1x8x32xf32, #tpu.memory_space<vmem>>, %arg2: memref<1x32xf32, #tpu.memory_space<vmem>>, %arg3: memref<1x32xf32, #tpu.memory_space<vmem>>, %arg4: memref<32x96xbf16, #tpu.memory_space<vmem>>, %arg5: memref<1x96xf32, #tpu.memory_space<vmem>>, %arg6: memref<32x32xbf16, #tpu.memory_space<vmem>>, %arg7: memref<1x32xf32, #tpu.memory_space<vmem>>, %arg8: memref<1x8x32xf32, #tpu.memory_space<vmem>>) attributes {dimension_semantics = [#tpu.dimension_semantics<parallel>], iteration_bounds = array<i64: 2>, scalar_prefetch = 0 : i64, scratch_operands = 0 : i64, tpu.core_type = #tpu.core_type<tc>, window_params = [{transform_indices = @transform_0, window_bounds = array<i64: 1, 8, 32>}, {pipeline_mode = #tpu.pipeline_mode<synchronous>, transform_indices = @transform_1, window_bounds = array<i64: 1, 32>}, {pipeline_mode = #tpu.pipeline_mode<synchronous>, transform_indices = @transform_2, window_bounds = array<i64: 1, 32>}, {pipeline_mode = #tpu.pipeline_mode<synchronous>, transform_indices = @transform_3, window_bounds = array<i64: 32, 96>}, {pipeline_mode = #tpu.pipeline_mode<synchronous>, transform_indices = @transform_4, window_bounds = array<i64: 1, 96>}, {pipeline_mode = #tpu.pipeline_mode<synchronous>, transform_indices = @transform_5, window_bounds = array<i64: 32, 32>}, {pipeline_mode = #tpu.pipeline_mode<synchronous>, transform_indices = @transform_6, window_bounds = array<i64: 1, 32>}, {transform_indices = @transform_7, window_bounds = array<i64: 1, 8, 32>}]} {
    %c0 = arith.constant 0 : index
    %c0_0 = arith.constant 0 : index
    %c0_1 = arith.constant 0 : index
    %0 = vector.load %arg1[%c0, %c0_0, %c0_1] : memref<1x8x32xf32, #tpu.memory_space<vmem>>, vector<1x8x32xf32>
    %cst = arith.constant dense<0.000000e+00> : vector<1x8xf32>
    %1 = vector.multi_reduction <add>, %0, %cst [2] : vector<1x8x32xf32> to vector<1x8xf32>
    %2 = vector.shape_cast %1 : vector<1x8xf32> to vector<1x8x1xf32>
    %cst_2 = arith.constant 3.200000e+01 : f32
    %3 = vector.broadcast %cst_2 : f32 to vector<1x8x1xf32>
    %4 = arith.divf %2, %3 : vector<1x8x1xf32>
    %5 = vector.broadcast %4 : vector<1x8x1xf32> to vector<1x8x32xf32>
    %6 = arith.subf %0, %5 : vector<1x8x32xf32>
    %7 = arith.mulf %6, %6 : vector<1x8x32xf32>
    %cst_3 = arith.constant dense<0.000000e+00> : vector<1x8xf32>
    %8 = vector.multi_reduction <add>, %7, %cst_3 [2] : vector<1x8x32xf32> to vector<1x8xf32>
    %9 = vector.shape_cast %8 : vector<1x8xf32> to vector<1x8x1xf32>
    %cst_4 = arith.constant 3.200000e+01 : f32
    %10 = vector.broadcast %cst_4 : f32 to vector<1x8x1xf32>
    %11 = arith.divf %9, %10 : vector<1x8x1xf32>
    %12 = vector.broadcast %4 : vector<1x8x1xf32> to vector<1x8x32xf32>
    %13 = arith.subf %0, %12 : vector<1x8x32xf32>
    %cst_5 = arith.constant 9.99999974E-6 : f32
    %14 = vector.broadcast %cst_5 : f32 to vector<1x8x1xf32>
    %15 = arith.addf %11, %14 : vector<1x8x1xf32>
    %16 = math.rsqrt %15 : vector<1x8x1xf32>
    %17 = vector.broadcast %16 : vector<1x8x1xf32> to vector<1x8x32xf32>
    %18 = arith.mulf %13, %17 : vector<1x8x32xf32>
    %c0_6 = arith.constant 0 : index
    %c0_7 = arith.constant 0 : index
    %19 = vector.load %arg2[%c0_6, %c0_7] : memref<1x32xf32, #tpu.memory_space<vmem>>, vector<1x32xf32>
    %20 = vector.shape_cast %19 : vector<1x32xf32> to vector<1x1x32xf32>
    %21 = vector.broadcast %20 : vector<1x1x32xf32> to vector<1x8x32xf32>
    %22 = arith.mulf %18, %21 : vector<1x8x32xf32>
    %c0_8 = arith.constant 0 : index
    %c0_9 = arith.constant 0 : index
    %23 = vector.load %arg3[%c0_8, %c0_9] : memref<1x32xf32, #tpu.memory_space<vmem>>, vector<1x32xf32>
    %24 = vector.shape_cast %23 : vector<1x32xf32> to vector<1x1x32xf32>
    %25 = vector.broadcast %24 : vector<1x1x32xf32> to vector<1x8x32xf32>
    %26 = arith.addf %22, %25 : vector<1x8x32xf32>
    %27 = arith.truncf %26 : vector<1x8x32xf32> to vector<1x8x32xbf16>
    %c0_10 = arith.constant 0 : index
    %c0_11 = arith.constant 0 : index
    %28 = vector.load %arg4[%c0_10, %c0_11] : memref<32x96xbf16, #tpu.memory_space<vmem>>, vector<32x96xbf16>
    %cst_12 = arith.constant dense<0.000000e+00> : vector<1x8x96xf32>
    %29 = tpu.matmul %27, %28, %cst_12 {dimension_numbers = #tpu.dot_dimension_numbers<[2], [0], [0, 1], [1], [0, 0, 0, 1, 1, 1], [], []>} : vector<1x8x32xbf16>, vector<32x96xbf16>, vector<1x8x96xf32> -> vector<1x8x96xf32>
    %c0_13 = arith.constant 0 : index
    %c0_14 = arith.constant 0 : index
    %30 = vector.load %arg5[%c0_13, %c0_14] : memref<1x96xf32, #tpu.memory_space<vmem>>, vector<1x96xf32>
    %31 = vector.shape_cast %30 : vector<1x96xf32> to vector<1x1x96xf32>
    %32 = vector.broadcast %31 : vector<1x1x96xf32> to vector<1x8x96xf32>
    %33 = arith.addf %29, %32 : vector<1x8x96xf32>
    %34 = arith.truncf %33 : vector<1x8x96xf32> to vector<1x8x96xbf16>
    %35 = vector.extract_strided_slice %34 {offsets = [0, 0, 0], sizes = [1, 8, 32], strides = [1, 1, 1]} : vector<1x8x96xbf16> to vector<1x8x32xbf16>
    %36 = vector.extract_strided_slice %34 {offsets = [0, 0, 32], sizes = [1, 8, 32], strides = [1, 1, 1]} : vector<1x8x96xbf16> to vector<1x8x32xbf16>
    %37 = vector.extract_strided_slice %34 {offsets = [0, 0, 64], sizes = [1, 8, 32], strides = [1, 1, 1]} : vector<1x8x96xbf16> to vector<1x8x32xbf16>
    %c0_15 = arith.constant 0 : index
    %c0_16 = arith.constant 0 : index
    %38 = vector.load %arg6[%c0_15, %c0_16] : memref<32x32xbf16, #tpu.memory_space<vmem>>, vector<32x32xbf16>
    %cst_17 = arith.constant 0.000000e+00 : f32
    %39 = vector.broadcast %cst_17 : f32 to vector<1x8x32xf32>
    %40 = vector.extract_strided_slice %35 {offsets = [0, 0, 0], sizes = [1, 8, 8], strides = [1, 1, 1]} : vector<1x8x32xbf16> to vector<1x8x8xbf16>
    %41 = vector.extract_strided_slice %36 {offsets = [0, 0, 0], sizes = [1, 8, 8], strides = [1, 1, 1]} : vector<1x8x32xbf16> to vector<1x8x8xbf16>
    %42 = vector.extract_strided_slice %37 {offsets = [0, 0, 0], sizes = [1, 8, 8], strides = [1, 1, 1]} : vector<1x8x32xbf16> to vector<1x8x8xbf16>
    "tpu.trace_start"() <{level = 10 : i32, message = "bqd,bkd->bqk"}> : () -> ()
    %cst_18 = arith.constant dense<0.000000e+00> : vector<1x8x8xf32>
    %43 = tpu.matmul %40, %41, %cst_18 {dimension_numbers = #tpu.dot_dimension_numbers<[2], [2], [1], [1], [0, 0, 0, 1, 1, 1], [0], [0]>} : vector<1x8x8xbf16>, vector<1x8x8xbf16>, vector<1x8x8xf32> -> vector<1x8x8xf32>
    "tpu.trace_stop"() : () -> ()
    %cst_19 = arith.constant dense<0xFF800000> : vector<1x8xf32>
    %44 = vector.multi_reduction <maximumf>, %43, %cst_19 [2] : vector<1x8x8xf32> to vector<1x8xf32>
    %45 = vector.shape_cast %44 : vector<1x8xf32> to vector<1x8x1xf32>
    %46 = vector.broadcast %45 : vector<1x8x1xf32> to vector<1x8x8xf32>
    %47 = arith.subf %43, %46 : vector<1x8x8xf32>
    %48 = math.exp %47 : vector<1x8x8xf32>
    %cst_20 = arith.constant dense<0.000000e+00> : vector<1x8xf32>
    %49 = vector.multi_reduction <add>, %48, %cst_20 [2] : vector<1x8x8xf32> to vector<1x8xf32>
    %50 = vector.shape_cast %49 : vector<1x8xf32> to vector<1x8x1xf32>
    %51 = tpu.reciprocal %50 {approx = true} : vector<1x8x1xf32> -> vector<1x8x1xf32>
    %52 = vector.broadcast %51 : vector<1x8x1xf32> to vector<1x8x8xf32>
    %53 = arith.mulf %48, %52 : vector<1x8x8xf32>
    %54 = arith.truncf %53 : vector<1x8x8xf32> to vector<1x8x8xbf16>
    "tpu.trace_start"() <{level = 10 : i32, message = "bqk,bkd->bqd"}> : () -> ()
    %cst_21 = arith.constant dense<0.000000e+00> : vector<1x8x8xf32>
    %55 = tpu.matmul %54, %42, %cst_21 {dimension_numbers = #tpu.dot_dimension_numbers<[2], [1], [1], [2], [0, 0, 0, 1, 1, 2], [0], [0]>} : vector<1x8x8xbf16>, vector<1x8x8xbf16>, vector<1x8x8xf32> -> vector<1x8x8xf32>
    "tpu.trace_stop"() : () -> ()
    %56 = vector.extract_strided_slice %35 {offsets = [0, 0, 8], sizes = [1, 8, 8], strides = [1, 1, 1]} : vector<1x8x32xbf16> to vector<1x8x8xbf16>
    %57 = vector.extract_strided_slice %36 {offsets = [0, 0, 8], sizes = [1, 8, 8], strides = [1, 1, 1]} : vector<1x8x32xbf16> to vector<1x8x8xbf16>
    %58 = vector.extract_strided_slice %37 {offsets = [0, 0, 8], sizes = [1, 8, 8], strides = [1, 1, 1]} : vector<1x8x32xbf16> to vector<1x8x8xbf16>
    "tpu.trace_start"() <{level = 10 : i32, message = "bqd,bkd->bqk"}> : () -> ()
    %cst_22 = arith.constant dense<0.000000e+00> : vector<1x8x8xf32>
    %59 = tpu.matmul %56, %57, %cst_22 {dimension_numbers = #tpu.dot_dimension_numbers<[2], [2], [1], [1], [0, 0, 0, 1, 1, 1], [0], [0]>} : vector<1x8x8xbf16>, vector<1x8x8xbf16>, vector<1x8x8xf32> -> vector<1x8x8xf32>
    "tpu.trace_stop"() : () -> ()
    %cst_23 = arith.constant dense<0xFF800000> : vector<1x8xf32>
    %60 = vector.multi_reduction <maximumf>, %59, %cst_23 [2] : vector<1x8x8xf32> to vector<1x8xf32>
    %61 = vector.shape_cast %60 : vector<1x8xf32> to vector<1x8x1xf32>
    %62 = vector.broadcast %61 : vector<1x8x1xf32> to vector<1x8x8xf32>
    %63 = arith.subf %59, %62 : vector<1x8x8xf32>
    %64 = math.exp %63 : vector<1x8x8xf32>
    %cst_24 = arith.constant dense<0.000000e+00> : vector<1x8xf32>
    %65 = vector.multi_reduction <add>, %64, %cst_24 [2] : vector<1x8x8xf32> to vector<1x8xf32>
    %66 = vector.shape_cast %65 : vector<1x8xf32> to vector<1x8x1xf32>
    %67 = tpu.reciprocal %66 {approx = true} : vector<1x8x1xf32> -> vector<1x8x1xf32>
    %68 = vector.broadcast %67 : vector<1x8x1xf32> to vector<1x8x8xf32>
    %69 = arith.mulf %64, %68 : vector<1x8x8xf32>
    %70 = arith.truncf %69 : vector<1x8x8xf32> to vector<1x8x8xbf16>
    "tpu.trace_start"() <{level = 10 : i32, message = "bqk,bkd->bqd"}> : () -> ()
    %cst_25 = arith.constant dense<0.000000e+00> : vector<1x8x8xf32>
    %71 = tpu.matmul %70, %58, %cst_25 {dimension_numbers = #tpu.dot_dimension_numbers<[2], [1], [1], [2], [0, 0, 0, 1, 1, 2], [0], [0]>} : vector<1x8x8xbf16>, vector<1x8x8xbf16>, vector<1x8x8xf32> -> vector<1x8x8xf32>
    "tpu.trace_stop"() : () -> ()
    %72 = vector.extract_strided_slice %35 {offsets = [0, 0, 16], sizes = [1, 8, 8], strides = [1, 1, 1]} : vector<1x8x32xbf16> to vector<1x8x8xbf16>
    %73 = vector.extract_strided_slice %36 {offsets = [0, 0, 16], sizes = [1, 8, 8], strides = [1, 1, 1]} : vector<1x8x32xbf16> to vector<1x8x8xbf16>
    %74 = vector.extract_strided_slice %37 {offsets = [0, 0, 16], sizes = [1, 8, 8], strides = [1, 1, 1]} : vector<1x8x32xbf16> to vector<1x8x8xbf16>
    "tpu.trace_start"() <{level = 10 : i32, message = "bqd,bkd->bqk"}> : () -> ()
    %cst_26 = arith.constant dense<0.000000e+00> : vector<1x8x8xf32>
    %75 = tpu.matmul %72, %73, %cst_26 {dimension_numbers = #tpu.dot_dimension_numbers<[2], [2], [1], [1], [0, 0, 0, 1, 1, 1], [0], [0]>} : vector<1x8x8xbf16>, vector<1x8x8xbf16>, vector<1x8x8xf32> -> vector<1x8x8xf32>
    "tpu.trace_stop"() : () -> ()
    %cst_27 = arith.constant dense<0xFF800000> : vector<1x8xf32>
    %76 = vector.multi_reduction <maximumf>, %75, %cst_27 [2] : vector<1x8x8xf32> to vector<1x8xf32>
    %77 = vector.shape_cast %76 : vector<1x8xf32> to vector<1x8x1xf32>
    %78 = vector.broadcast %77 : vector<1x8x1xf32> to vector<1x8x8xf32>
    %79 = arith.subf %75, %78 : vector<1x8x8xf32>
    %80 = math.exp %79 : vector<1x8x8xf32>
    %cst_28 = arith.constant dense<0.000000e+00> : vector<1x8xf32>
    %81 = vector.multi_reduction <add>, %80, %cst_28 [2] : vector<1x8x8xf32> to vector<1x8xf32>
    %82 = vector.shape_cast %81 : vector<1x8xf32> to vector<1x8x1xf32>
    %83 = tpu.reciprocal %82 {approx = true} : vector<1x8x1xf32> -> vector<1x8x1xf32>
    %84 = vector.broadcast %83 : vector<1x8x1xf32> to vector<1x8x8xf32>
    %85 = arith.mulf %80, %84 : vector<1x8x8xf32>
    %86 = arith.truncf %85 : vector<1x8x8xf32> to vector<1x8x8xbf16>
    "tpu.trace_start"() <{level = 10 : i32, message = "bqk,bkd->bqd"}> : () -> ()
    %cst_29 = arith.constant dense<0.000000e+00> : vector<1x8x8xf32>
    %87 = tpu.matmul %86, %74, %cst_29 {dimension_numbers = #tpu.dot_dimension_numbers<[2], [1], [1], [2], [0, 0, 0, 1, 1, 2], [0], [0]>} : vector<1x8x8xbf16>, vector<1x8x8xbf16>, vector<1x8x8xf32> -> vector<1x8x8xf32>
    "tpu.trace_stop"() : () -> ()
    %88 = vector.extract_strided_slice %35 {offsets = [0, 0, 24], sizes = [1, 8, 8], strides = [1, 1, 1]} : vector<1x8x32xbf16> to vector<1x8x8xbf16>
    %89 = vector.extract_strided_slice %36 {offsets = [0, 0, 24], sizes = [1, 8, 8], strides = [1, 1, 1]} : vector<1x8x32xbf16> to vector<1x8x8xbf16>
    %90 = vector.extract_strided_slice %37 {offsets = [0, 0, 24], sizes = [1, 8, 8], strides = [1, 1, 1]} : vector<1x8x32xbf16> to vector<1x8x8xbf16>
    "tpu.trace_start"() <{level = 10 : i32, message = "bqd,bkd->bqk"}> : () -> ()
    %cst_30 = arith.constant dense<0.000000e+00> : vector<1x8x8xf32>
    %91 = tpu.matmul %88, %89, %cst_30 {dimension_numbers = #tpu.dot_dimension_numbers<[2], [2], [1], [1], [0, 0, 0, 1, 1, 1], [0], [0]>} : vector<1x8x8xbf16>, vector<1x8x8xbf16>, vector<1x8x8xf32> -> vector<1x8x8xf32>
    "tpu.trace_stop"() : () -> ()
    %cst_31 = arith.constant dense<0xFF800000> : vector<1x8xf32>
    %92 = vector.multi_reduction <maximumf>, %91, %cst_31 [2] : vector<1x8x8xf32> to vector<1x8xf32>
    %93 = vector.shape_cast %92 : vector<1x8xf32> to vector<1x8x1xf32>
    %94 = vector.broadcast %93 : vector<1x8x1xf32> to vector<1x8x8xf32>
    %95 = arith.subf %91, %94 : vector<1x8x8xf32>
    %96 = math.exp %95 : vector<1x8x8xf32>
    %cst_32 = arith.constant dense<0.000000e+00> : vector<1x8xf32>
    %97 = vector.multi_reduction <add>, %96, %cst_32 [2] : vector<1x8x8xf32> to vector<1x8xf32>
    %98 = vector.shape_cast %97 : vector<1x8xf32> to vector<1x8x1xf32>
    %99 = tpu.reciprocal %98 {approx = true} : vector<1x8x1xf32> -> vector<1x8x1xf32>
    %100 = vector.broadcast %99 : vector<1x8x1xf32> to vector<1x8x8xf32>
    %101 = arith.mulf %96, %100 : vector<1x8x8xf32>
    %102 = arith.truncf %101 : vector<1x8x8xf32> to vector<1x8x8xbf16>
    "tpu.trace_start"() <{level = 10 : i32, message = "bqk,bkd->bqd"}> : () -> ()
    %cst_33 = arith.constant dense<0.000000e+00> : vector<1x8x8xf32>
    %103 = tpu.matmul %102, %90, %cst_33 {dimension_numbers = #tpu.dot_dimension_numbers<[2], [1], [1], [2], [0, 0, 0, 1, 1, 2], [0], [0]>} : vector<1x8x8xbf16>, vector<1x8x8xbf16>, vector<1x8x8xf32> -> vector<1x8x8xf32>
    "tpu.trace_stop"() : () -> ()
    %104 = tpu.concatenate %55, %71, %87, %103 in 2 : vector<1x8x8xf32>, vector<1x8x8xf32>, vector<1x8x8xf32>, vector<1x8x8xf32> -> vector<1x8x32xf32>
    %105 = arith.truncf %104 : vector<1x8x32xf32> to vector<1x8x32xbf16>
    %cst_34 = arith.constant dense<0.000000e+00> : vector<1x8x32xf32>
    %106 = tpu.matmul %105, %38, %cst_34 {dimension_numbers = #tpu.dot_dimension_numbers<[2], [0], [0, 1], [1], [0, 0, 0, 1, 1, 1], [], []>} : vector<1x8x32xbf16>, vector<32x32xbf16>, vector<1x8x32xf32> -> vector<1x8x32xf32>
    %107 = arith.addf %39, %106 : vector<1x8x32xf32>
    %c0_35 = arith.constant 0 : index
    %c0_36 = arith.constant 0 : index
    %108 = vector.load %arg7[%c0_35, %c0_36] : memref<1x32xf32, #tpu.memory_space<vmem>>, vector<1x32xf32>
    %109 = vector.shape_cast %108 : vector<1x32xf32> to vector<1x1x32xf32>
    %110 = vector.broadcast %109 : vector<1x1x32xf32> to vector<1x8x32xf32>
    %111 = arith.addf %107, %110 : vector<1x8x32xf32>
    %c0_37 = arith.constant 0 : index
    %c0_38 = arith.constant 0 : index
    %c0_39 = arith.constant 0 : index
    %112 = vector.load %arg8[%c0_37, %c0_38, %c0_39] : memref<1x8x32xf32, #tpu.memory_space<vmem>>, vector<1x8x32xf32>
    tpu.vector_store %arg8[%c0_37, %c0_38, %c0_39], %111 {strides = array<i32>} : memref<1x8x32xf32, #tpu.memory_space<vmem>>, vector<1x8x32xf32>,
    return
  }
  func.func @transform_0(%arg0: i32) -> (i32, i32, i32) {
    %c0_i32 = arith.constant 0 : i32
    %c0_i32_0 = arith.constant 0 : i32
    %c0_i32_1 = arith.constant 0 : i32
    return %arg0, %c0_i32, %c0_i32_0 : i32, i32, i32
  }
  func.func @transform_1(%arg0: i32) -> (i32, i32) {
    %c0_i32 = arith.constant 0 : i32
    %c0_i32_0 = arith.constant 0 : i32
    %c0_i32_1 = arith.constant 0 : i32
    return %c0_i32, %c0_i32_0 : i32, i32
  }
  func.func @transform_2(%arg0: i32) -> (i32, i32) {
    %c0_i32 = arith.constant 0 : i32
    %c0_i32_0 = arith.constant 0 : i32
    %c0_i32_1 = arith.constant 0 : i32
    return %c0_i32, %c0_i32_0 : i32, i32
  }
  func.func @transform_3(%arg0: i32) -> (i32, i32) {
    %c0_i32 = arith.constant 0 : i32
    %c0_i32_0 = arith.constant 0 : i32
    %c0_i32_1 = arith.constant 0 : i32
    return %c0_i32, %c0_i32_0 : i32, i32
  }
  func.func @transform_4(%arg0: i32) -> (i32, i32) {
    %c0_i32 = arith.constant 0 : i32
    %c0_i32_0 = arith.constant 0 : i32
    %c0_i32_1 = arith.constant 0 : i32
    return %c0_i32, %c0_i32_0 : i32, i32
  }
  func.func @transform_5(%arg0: i32) -> (i32, i32) {
    %c0_i32 = arith.constant 0 : i32
    %c0_i32_0 = arith.constant 0 : i32
    %c0_i32_1 = arith.constant 0 : i32
    return %c0_i32, %c0_i32_0 : i32, i32
  }
  func.func @transform_6(%arg0: i32) -> (i32, i32) {
    %c0_i32 = arith.constant 0 : i32
    %c0_i32_0 = arith.constant 0 : i32
    %c0_i32_1 = arith.constant 0 : i32
    return %c0_i32, %c0_i32_0 : i32, i32
  }
  func.func @transform_7(%arg0: i32) -> (i32, i32, i32) {
    %c0_i32 = arith.constant 0 : i32
    %c0_i32_0 = arith.constant 0 : i32
    %c0_i32_1 = arith.constant 0 : i32
    return %arg0, %c0_i32, %c0_i32_0 : i32, i32, i32
  }
}

</mosaic_0001>

<bundles_post_ra>
// kernel: tpu_custom_call.1
= control target key start
LH: loop header
LB: loop body
LE: loop exit
PB: predicated region body
PF: predicated region fallthrough
CT: control target
= control target key end

     0   :  { %12 = vsyncpa [#allocation3], 0  ;;  %s1823_s0 = inlined_call_operand.hbm [shape: f32[2,8,32], index: 0, kind: input, shape index: {}]   ;;  %s1824_s1 = inlined_call_operand.vmem [shape: f32[1,32], index: 1, kind: input, shape index: {}]   ;;  %s1825_s2 = inlined_call_operand.vmem [shape: f32[1,32], index: 2, kind: input, shape index: {}]   ;;  %s1826_s3 = inlined_call_operand.hbm [shape: bf16[32,96], index: 3, kind: input, shape index: {}]   ;;  %s1827_s4 = inlined_call_operand.hbm [shape: f32[1,96], index: 4, kind: input, shape index: {}]   ;;  %s1828_s5 = inlined_call_operand.vmem [shape: bf16[32,32], index: 5, kind: input, shape index: {}]   ;;  %s1829_s6 = inlined_call_operand.vmem [shape: f32[1,32], index: 6, kind: input, shape index: {}]   ;;  %s1830_s7 = inlined_call_operand.hbm [shape: f32[2,8,32], index: 7, kind: output, shape index: {}]  }
   0x1   :  { %14 = vsyncpa [#allocation3 + $0x1], 0 }
   0x2   :  { %15 = vsyncpa [#allocation6], 0 }
   0x3   :  { %16 = vsyncpa [#allocation4], 0 }
   0x4   :  { %18 = vsyncpa [#allocation4 + $0x1], 0  ;;  %s1498_s24 = smov 0   ;;  %s1500_s25 = smov 0  }
   0x5   :  { %s1502_s26 = smov 0   ;;  %s1504_s27 = smov 0  }
   0x6 LB: > { %s1519_s28 = sadd.s32 4294967295, %s1434_s27   ;;  %s1051_s29 = sadd.s32 4294967294, %s1434_s27   ;;  %s1434_s27 = sphi %s1504_s27, %s1850_s27   ;;  %s1430_s26 = sphi %s1502_s26, %s1849_s26   ;;  %s1426_s25 = sphi %s1500_s25, %s1848_s25   ;;  %s1422_s24 = sphi %s1498_s24, %s1847_s24  }
   0x7   : > { %p44_p0 = scmp.ne.s32.totalorder %s1426_s25, %s1422_s24  ;;  %p1831_p1 = scmp.eq.s32.totalorder %s1519_s28, 0 }
   0x8   : > { %p200_p3 = scmp.eq.s32.totalorder %s1051_s29, 1  ;;  %p1052_p5 = scmp.ge.s32.totalorder %s1434_s27, 1 }
   0x9   : > { %p1528_p4 = por %p1831_p1, %p44_p0  ;;  %p207_p7 = scmp.lt.s32.totalorder %s1434_s27, 3 }
   0xa   : > { %p1533_p6 = por %p200_p3, %p44_p0  ;;  %s1436_s10 = smov [#allocation5]  }
   0xb   : > { %s1834_s30 = scalar_select %p1528_p4, 1, 0 }
   0xc   : > { %s1835_s8 = scalar_select %p1533_p6, 1, 0 }
   0xd   : > { %p1538_p8 = pnand %p1052_p5, %p207_p7  ;;  %s225_s11 = sshll.u32 %s1436_s10, 4  ;;  %s1542_s11 = int_to_ptr.vmem [resolvable:$true] %s225_s11 }
   0xe   : > { %s1437_s13 = smov [#allocation7]   ;;  %s1278_s17 = scalar_lea.hbm %s1826_s3, 256 }
   0xf   : > { %p1183_p9 = pneg %p1538_p8  ;;  %s239_s14 = sshll.u32 %s1437_s13, 4  ;;  %s1553_s14 = int_to_ptr.vmem [resolvable:$true] %s239_s14 }
  0x10   : > { %p1279_p12 = scmp.ne.s32.totalorder %s1826_s3, %s1278_s17  ;;  %p1285_p5 = scmp.lt.u32.totalorder %s1278_s17, %s1826_s3 }
  0x11   : > { %p1549_p11 = pnand %p1183_p9, %p1831_p1 }
  0x13   : > { %p1280_p13 = pneg %p1549_p11 }
  0x15   : > { %p1281_p0 = pnand %p1280_p13, %p1279_p12 }
  0x17   : > { %p1282_p3 = pneg %p1281_p0 }
  0x19   : > { %p1287_p7 = pnand %p1285_p5, %p1282_p3 }
  0x1b   : > { %1290 = shalt.err (!%p1287_p7)
}
  0x1c   : > { %s1291_s22 = scalar_lea.vmem %s1542_s11, 256  ;;  %p1299_p2 = scmp.lt.s32.totalorder %s1542_s11, %s1542_s11 }
  0x1d   : > { %p1292_p9 = scmp.ne.s32.totalorder %s1542_s11, %s1291_s22  ;;  %p1300_p12 = scmp.lt.s32.totalorder %s1291_s22, %s1291_s22 }
  0x1f   : > { %p1294_p10 = pnand %p1292_p9, %p1280_p13  ;;  %p1301_p0 = por %p1300_p12, %p1299_p2 }
  0x21   : > { %p1295_p1 = pneg %p1294_p10 }
  0x23   : > { %p1302_p6 = pnand %p1301_p0, %p1295_p1 }
  0x25   : > { %1305 = shalt.err (!%p1302_p6)
}
  0x26   : > { %s1438_s23 = smov 64   ;;  %s1439_s29 = smov 4  }
  0x27   : > { %1186 = dma.hbm_to_vmem [thread:$0]  (!%p1549_p11), %s1826_s3, 256, %s1542_s11, [#allocation6], %s1438_s23, %s1438_s23, %s1439_s29  }
  0x28   : > { %s1306_s17 = scalar_lea.hbm %s1827_s4, 16 }
  0x29   : > { %p1307_p2 = scmp.ne.s32.totalorder %s1827_s4, %s1306_s17  ;;  %p1313_p10 = scmp.lt.u32.totalorder %s1306_s17, %s1827_s4 }
  0x2b   : > { %p1309_p1 = pnand %p1307_p2, %p1280_p13 }
  0x2d   : > { %p1310_p6 = pneg %p1309_p1 }
  0x2f   : > { %p1315_p3 = pnand %p1313_p10, %p1310_p6 }
  0x31   : > { %1318 = shalt.err (!%p1315_p3)
}
  0x32   : > { %s1319_s11 = scalar_lea.vmem %s1553_s14, 16  ;;  %s1326_s22 = scalar_lea.vmem %s1553_s14, 32 }
  0x33   : > { %p1320_p5 = scmp.ne.s32.totalorder %s1553_s14, %s1319_s11  ;;  %p1327_p12 = scmp.lt.s32.totalorder %s1553_s14, %s1553_s14 }
  0x34   : > { %p1328_p0 = scmp.lt.s32.totalorder %s1326_s22, %s1319_s11 }
  0x35   : > { %p1322_p7 = pnand %p1320_p5, %p1280_p13 }
  0x36   : > { %p1329_p2 = por %p1328_p0, %p1327_p12 }
  0x37   : > { %p1323_p9 = pneg %p1322_p7 }
  0x39   : > { %p1330_p1 = pnand %p1329_p2, %p1323_p9 }
  0x3b   : > { %1333 = shalt.err (!%p1330_p1)
}
  0x3c   : > { %1189 = dma.hbm_to_vmem [thread:$0]  (!%p1549_p11), %s1827_s4, 16, %s1553_s14, [#allocation6]  }
  0x3d   : > { %s1609_s10 = sadd.s32 1, %s1434_s27   ;;  %s31_s12 = sadd.s32 1, %s1430_s26 }
  0x3e   : > { %s28_s13 = ssub.s32 %s1434_s27, %s1609_s10  ;;  %p38_p13 = scmp.ne.s32.totalorder %s1430_s26, %s1426_s25 }
  0x3f   : > { %p29_p6 = scmp.eq.s32.totalorder %s28_s13, 0  ;;  %p39_p10 = scmp.eq.s32.totalorder %s1434_s27, 0 }
  0x40   : > { %p1838_p3 = scmp.eq.s32.totalorder %s1519_s28, 1  ;;  %p1200_p7 = scmp.lt.s32.totalorder %s1434_s27, 2 }
  0x41   : > { %s1625_s16 = scalar_select %p29_p6, %s1430_s26, %s31_s12  }
  0x42   : > { %p1619_p5 = por %p1838_p3, %p38_p13  ;;  %p40_p9 = por %p39_p10, %p38_p13 }
  0x43   : > { %s256_s17 = sand.u32 1, %s1430_s26   ;;  %s1057_s14 = sshll.u32 %s1434_s27, 7 }
  0x44   : > { %s1839_s15 = scalar_select %p1619_p5, 1, 0 }
  0x45   : > { %s1056_s18 = sshll.u32 %s256_s17, 3  ;;  %s1632_s21 = scalar_lea.hbm %s1823_s0, %s1057_s14 }
  0x46   : > { %s260_s11 = scalar_lea.vmem [#allocation2], %s1056_s18  ;;  %p1636_p11 = pnand %p1200_p7, %p40_p9 }
  0x47   : > { %s267_s22 = sshll.u32 %s260_s11, 4  ;;  %s257_s29 = scalar_lea.sflag [#allocation3], %s256_s17  ;;  %s1634_s22 = int_to_ptr.vmem [resolvable:$true] %s267_s22 }
  0x48   : > { %s1334_s12 = scalar_lea.hbm %s1632_s21, 128  ;;  %p1336_p0 = pneg %p1636_p11 }
  0x49   : > { %p1335_p12 = scmp.ne.s32.totalorder %s1632_s21, %s1334_s12  ;;  %s1339_s14 = scalar_lea.hbm %s1823_s0, 256 }
  0x4a   : > { %p1340_p13 = scmp.lt.u32.totalorder %s1632_s21, %s1823_s0  ;;  %p1341_p6 = scmp.lt.u32.totalorder %s1339_s14, %s1334_s12 }
  0x4b   : > { %p1337_p2 = pnand %p1336_p0, %p1335_p12  ;;  %p1343_p3 = scmp.lt.u32.totalorder %s1334_s12, %s1632_s21 }
  0x4c   : > { %p1342_p10 = por %p1341_p6, %p1340_p13 }
  0x4d   : > { %p1338_p1 = pneg %p1337_p2 }
  0x4e   : > { %p1344_p7 = por %p1343_p3, %p1342_p10 }
  0x50   : > { %p1345_p9 = pnand %p1344_p7, %p1338_p1 }
  0x52   : > { %1348 = shalt.err (!%p1345_p9)
}
  0x53   : > { %s1349_s17 = scalar_lea.vmem %s1634_s22, 128  ;;  %s1440_s11 = smov [#allocation2]  }
  0x54   : > { %p1350_p12 = scmp.ne.s32.totalorder %s1634_s22, %s1349_s17  ;;  %s1354_s13 = sshll.u32 %s1440_s11, 4  ;;  %s1355_s13 = int_to_ptr.vmem [resolvable:$false] %s1354_s13 }
  0x55   : > { %s1356_s18 = scalar_lea.vmem %s1355_s13, 256  ;;  %p1357_p4 = scmp.lt.s32.totalorder %s1634_s22, %s1355_s13 }
  0x56   : > { %p1352_p2 = pnand %p1350_p12, %p1336_p0  ;;  %p1358_p13 = scmp.lt.s32.totalorder %s1356_s18, %s1349_s17 }
  0x58   : > { %p1353_p5 = pneg %p1352_p2  ;;  %p1359_p6 = por %p1358_p13, %p1357_p4 }
  0x5a   : > { %p1360_p10 = pnand %p1359_p6, %p1353_p5 }
  0x5c   : > { %1363 = shalt.err (!%p1360_p10)
}
  0x5d   : > { %1193 = dma.hbm_to_vmem [thread:$0]  (!%p1636_p11), %s1632_s21, 128, %s1634_s22, %s257_s29  }
  0x5e   : > { %276 = sbr.rel (%p1538_p8) target bundleno = 1907 (0x773), region = 48  ;;  %s1668_s12 = sand.u32 (!%p1538_p8), 1, %s1426_s25  }
  0x5f   : > { %s1059_s14 = sshll.u32 (!%p1538_p8), %s1668_s12, 3  ;;  %s279_s19 = scalar_lea.sflag (!%p1538_p8), [#allocation3], %s1668_s12 }
  0x60   : > { %s282_s20 = scalar_lea.vmem (!%p1538_p8), [#allocation2], %s1059_s14  ;;  %p1841_p4 = scmp.ne.s32.totalorder (!%p1538_p8), %s1834_s30, 0 }
  0x65   : > { %1409 = dma.done.wait (%p1841_p4), %s279_s19, 128  }
  0x66   : > { %1411 = vsyncadd (%p1841_p4), %s279_s19, 4294967168  ;;  %p1842_p5 = scmp.eq.s32.totalorder %s1519_s28, 0 }
  0x68   : > { %1413 = dma.done.wait (%p1842_p5), [#allocation6], 272   ;;  %p1843_p8 = pmov %p1842_p5 }
  0x69   : > { %vm323_vm0 = vcmask 261120   ;;  %v322_v0 = vld [vmem:[%s282_s20] sm:$0xff]  ;;  %v1256_v7 = vld [vmem:[#allocation5] sm:$0xff]   ;;  %v1441_v8 = vmov 0.0   ;;  %vm1442_vm1 = vmmov 0   ;;  %v1257_v9 = vld [vmem:[#allocation5 + $0x8] sm:$0xff]  }
  0x6a   : > { %1415 = vsyncadd (%p1843_p8), [#allocation6], 4294967024  ;;  %v324_v1 = vsel %vm323_vm0, %v322_v0, 0.0  ;;  %1107 = vmatprep.subr.bf16.mxu0 %v1441_v8  ;;  %1111 = vmatprep.mubr.msk.bf16.mxu0 %vm1442_vm1, %v1441_v8  ;;  %v1063_v14 = vld [vmem:[%s1824_s1] ss:$0 sm:$0xff]  ;;  %s1443_s23 = smov 120  }
  0x6b   : > { %325 = vadd.xlane.f32.xlu0 %v324_v1  ;;  %1108 = vmatpush3.bf16.msra.mxu0 %v1256_v7  ;;  %v1064_v16 = vld [vmem:[%s1825_s2] ss:$0 sm:$0xff]  ;;  %s1444_s29 = smov 96   ;;  %s1445_s17 = smov 88   ;;  %vm429_vm2 = vcmask 64512   ;;  %vm493_vm3 = vcmask 1043456  }
  0x6c   : > { %1115 = vmatprep.subr.bf16.mxu1 %v1441_v8  ;;  %1109 = vmatprep.subr.bf16.mxu0 %v1441_v8  ;;  %v1065_v20 = vld [vmem:[#allocation7] ss:$0 sm:$0xff]  ;;  %s1446_s11 = smov 80   ;;  %s1447_s13 = smov 112   ;;  %vm880_vm4 = vcmask 130048   ;;  %vm882_vm5 = vcmask 195584  }
  0x6d   : > { %1117 = vmatprep.mubr.msk.bf16.mxu1 %vm1442_vm1, %v1441_v8  ;;  %s1448_s18 = smov 72   ;;  %s1449_s19 = smov 104  }
  0x6e   : > { %s1450_s20 = smov 64   ;;  %s1451_s30 = smov 56  }
  0x6f   : > { %1110 = vmatpush3.bf16.msra.mxu0 %v1257_v9  ;;  %s1452_s9 = smov 48   ;;  %s1453_s21 = smov 40  }
  0x70   : > { %1121 = vmatprep.subr.bf16.mxu0 %v1441_v8  ;;  %s1454_s22 = smov 8   ;;  %p1844_p0 = scmp.ne.s32.totalorder %s1839_s15, 0 }
  0xf8   : > { %v326_v2 = vpop.xlane.xlu0 %325 }
  0xf9   : > { %v328_v3 = vmul.f32 0.03125, %v326_v2 }
  0xfb   : > { %v329_v4 = vsub.f32 %v322_v0, %v328_v3 }
  0xfd   : > { %v330_v5 = vmul.f32 %v329_v4, %v329_v4 }
  0xff   : > { %v331_v6 = vsel %vm323_vm0, %v330_v5, 0.0 }
 0x100   : > { %332 = vadd.xlane.f32.xlu0 %v331_v6 }
 0x18d   : > { %v333_v10 = vpop.xlane.xlu0 %332 }
 0x18e   : > { %v334_v11 = vmul.f32 0.03125, %v333_v10 }
 0x190   : > { %v335_v12 = vadd.f32 1e-05, %v334_v11 }
 0x192   : > { %1260 = vrsqrt.f32 %v335_v12 }
 0x19c   : > { %v1261_v13 = vpop.eup %1260 }
 0x19d   : > { %v337_v15 = vmul.f32 %v1261_v13, %v329_v4 }
 0x19f   : > { %v345_v17 = vmul.f32 %v1063_v14, %v337_v15 }
 0x1a1   : > { %v353_v18 = vadd.f32 %v1064_v16, %v345_v17 }
 0x1a3   : > { %v354_v19 = vpack.c.bf16 %v353_v18, %v353_v18 }
 0x1a5   : > { %1112 = vmatmul.mubr.msk.bf16.vlgmr.msra.gmra.mrb[0].mxu0 %vm323_vm0, %v354_v19 }
 0x1a6   : > { %1123 = vmatprep.mubr.msk.bf16.mxu0 %vm1442_vm1, %v1441_v8 }
 0x278   : > { %v415_v21 = vpop.f32.mrb[0].mxu0 }
 0x279   : > { %v416_v22 = vadd.f32 %v1065_v20, %v415_v21  ;;  %v1113_v23 = vpop.f32.mrb[1].mxu0 }
 0x27a   : > { %v418_v24 = vpop.f32.mrb[2].mxu0 }
 0x27b   : > { %v1701_v25 = vpack.c.bf16 %v416_v22, %v416_v22  ;;  %v1114_v26 = vpop.f32.mrb[3].mxu0 }
 0x27d   : > { %537 = vrot.lane.b32.xlu0 %v1701_v25, %s1443_s23  ;;  %427 = vrot.lane.b32.xlu1 %v1701_v25, %s1444_s29 }
 0x281   : > { %539 = vrot.lane.b32.xlu1 %v1701_v25, %s1445_s17  ;;  %s1457_s17 = smov [#allocation8]  }
 0x285   : > { %649 = vrot.lane.b32.xlu1 %v1701_v25, %s1446_s11  ;;  %s1368_s11 = sshll.u32 %s1457_s17, 4  ;;  %s1369_s11 = int_to_ptr.vmem [resolvable:$false] %s1368_s11 }
 0x289   : > { %647 = vrot.lane.b32.xlu1 %v1701_v25, %s1447_s13  ;;  %s1455_s13 = smov 16  }
 0x28d   : > { %759 = vrot.lane.b32.xlu1 %v1701_v25, %s1448_s18  ;;  %s1456_s18 = smov 24  }
 0x291   : > { %757 = vrot.lane.b32.xlu1 %v1701_v25, %s1449_s19 }
 0x2ef   : > { %v428_v27 = vpop.permute.xlu1 %427  ;;  %v538_v32 = vpop.permute.xlu0 %537 }
 0x2f0   : > { %v434_v28 = vsel %vm429_vm2, %v428_v27, 0 }
 0x2f1   : > { %1116 = vmatpush3.bf16.xpose.msra.mxu1 %v434_v28 }
 0x2f2   : > { %1127 = vmatprep.subr.bf16.mxu1 %v1441_v8 }
 0x2f3   : > { %v540_v29 = vpop.permute.xlu1 %539 }
 0x2f4   : > { %v545_v30 = vsel %vm429_vm2, %v540_v29, 0 }
 0x2f7   : > { %v650_v31 = vpop.permute.xlu1 %649 }
 0x2f8   : > { %1118 = vmatmul.mubr.msk.bf16.vlgmr.msra.gmra.mrb[0].mxu1 %vm429_vm2, %v1701_v25  ;;  %v655_v34 = vsel %vm429_vm2, %v650_v31, 0 }
 0x2f9   : > { %1128 = vmatpush3.bf16.xpose.msra.mxu1 %v545_v30  ;;  %1129 = vmatprep.mubr.msk.bf16.mxu1 %vm1442_vm1, %v1441_v8 }
 0x2fa   : > { %1139 = vmatprep.subr.bf16.mxu1 %v1441_v8 }
 0x2fb   : > { %v648_v33 = vpop.permute.xlu1 %647 }
 0x2ff   : > { %v760_v35 = vpop.permute.xlu1 %759 }
 0x300   : > { %1130 = vmatmul.mubr.msk.bf16.vlgmr.msra.gmra.mrb[4].mxu1 %vm429_vm2, %v538_v32  ;;  %v765_v36 = vsel %vm429_vm2, %v760_v35, 0 }
 0x301   : > { %1140 = vmatpush3.bf16.xpose.msra.mxu1 %v655_v34  ;;  %1141 = vmatprep.mubr.msk.bf16.mxu1 %vm1442_vm1, %v1441_v8 }
 0x302   : > { %1151 = vmatprep.subr.bf16.mxu1 %v1441_v8 }
 0x303   : > { %v758_v37 = vpop.permute.xlu1 %757 }
 0x308   : > { %1142 = vmatmul.mubr.msk.bf16.vlgmr.msra.gmra.mrb[8].mxu1 %vm429_vm2, %v648_v33 }
 0x309   : > { %1152 = vmatpush3.bf16.xpose.msra.mxu1 %v765_v36  ;;  %1153 = vmatprep.mubr.msk.bf16.mxu1 %vm1442_vm1, %v1441_v8 }
 0x30a   : > { %1163 = vmatprep.subr.bf16.mxu1 %v1441_v8 }
 0x310   : > { %1154 = vmatmul.mubr.msk.bf16.vlgmr.msra.gmra.mrb[12].mxu1 %vm429_vm2, %v758_v37 }
 0x311   : > { %1167 = vmatprep.mubr.msk.bf16.mxu1 %vm1442_vm1, %v1441_v8 }
 0x3cb   : > { %v470_v38 = vpop.f32.mrb[0].mxu1 }
 0x3cc   : > { %v1119_v39 = vpop.f32.mrb[1].mxu1  ;;  %v476_v40 = vsel %vm429_vm2, %v470_v38, -inf }
 0x3cd   : > { %477 = vmax.xlane.f32.xlu1 %v476_v40  ;;  %v473_v41 = vpop.f32.mrb[2].mxu1 }
 0x3ce   : > { %v1120_v42 = vpop.f32.mrb[3].mxu1 }
 0x3d3   : > { %v581_v43 = vpop.f32.mrb[4].mxu1 }
 0x3d4   : > { %v1131_v44 = vpop.f32.mrb[5].mxu1  ;;  %v587_v45 = vsel %vm429_vm2, %v581_v43, -inf }
 0x3d5   : > { %588 = vmax.xlane.f32.xlu0 %v587_v45  ;;  %v584_v46 = vpop.f32.mrb[6].mxu1 }
 0x3d6   : > { %v1132_v47 = vpop.f32.mrb[7].mxu1 }
 0x3d7   : > { %v1258_v47 = vld [vmem:[%s1828_s5] sm:$0xff]  }
 0x3d8   : > { %1164 = vmatpush3.bf16.msra.mxu1 %v1258_v47 }
 0x3d9   : > { %1165 = vmatprep.subr.bf16.mxu1 %v1441_v8 }
 0x3db   : > { %v691_v48 = vpop.f32.mrb[8].mxu1 }
 0x3dc   : > { %v1143_v49 = vpop.f32.mrb[9].mxu1  ;;  %v697_v50 = vsel %vm429_vm2, %v691_v48, -inf }
 0x3dd   : > { %698 = vmax.xlane.f32.xlu1 %v697_v50  ;;  %v694_v51 = vpop.f32.mrb[10].mxu1 }
 0x3de   : > { %v1144_v52 = vpop.f32.mrb[11].mxu1 }
 0x3e3   : > { %v801_v53 = vpop.f32.mrb[12].mxu1 }
 0x3e4   : > { %v1155_v54 = vpop.f32.mrb[13].mxu1  ;;  %v807_v55 = vsel %vm429_vm2, %v801_v53, -inf }
 0x3e5   : > { %808 = vmax.xlane.f32.xlu0 %v807_v55  ;;  %v804_v56 = vpop.f32.mrb[14].mxu1 }
 0x3e6   : > { %v1156_v57 = vpop.f32.mrb[15].mxu1 }
 0x45a   : > { %v478_v58 = vpop.xlane.xlu1 %477 }
 0x45b   : > { %v479_v59 = vsub.f32 %v470_v38, %v478_v58 }
 0x45d   : > { %v480_v60 = vmul.f32 1.442695, %v479_v59 }
 0x45f   : > { %1262 = vpow2.f32 %v480_v60 }
 0x462   : > { %v589_v61 = vpop.xlane.xlu0 %588 }
 0x463   : > { %v590_v62 = vsub.f32 %v581_v43, %v589_v61 }
 0x465   : > { %v591_v63 = vmul.f32 1.442695, %v590_v62 }
 0x467   : > { %1264 = vpow2.f32 %v591_v63  ;;  %v1077_v63 = vld [vmem:[%s1829_s6] ss:$0 sm:$0xff] }
 0x469   : > { %v1263_v0 = vpop.eup %1262 }
 0x46a   : > { %v482_v1 = vsel %vm429_vm2, %v1263_v0, 0.0  ;;  %v699_v10 = vpop.xlane.xlu1 %698 }
 0x46b   : > { %483 = vadd.xlane.f32.xlu1 %v482_v1  ;;  %v700_v11 = vsub.f32 %v691_v48, %v699_v10  ;;  %v1259_v48 = vld [vmem:[%s1828_s5 + $0x8] sm:$0xff]  }
 0x46c   : > { %1166 = vmatpush3.bf16.msra.mxu1 %v1259_v48 }
 0x46d   : > { %v701_v12 = vmul.f32 1.442695, %v700_v11 }
 0x471   : > { %v1265_v2 = vpop.eup %1264 }
 0x472   : > { %v809_v3 = vpop.xlane.xlu0 %808  ;;  %v593_v4 = vsel %vm429_vm2, %v1265_v2, 0.0 }
 0x473   : > { %v810_v5 = vsub.f32 %v801_v53, %v809_v3  ;;  %594 = vadd.xlane.f32.xlu0 %v593_v4 }
 0x475   : > { %v811_v6 = vmul.f32 1.442695, %v810_v5 }
 0x477   : > { %1266 = vpow2.f32 %v811_v6 }
 0x478   : > { %1268 = vpow2.f32 %v701_v12 }
 0x47c   : > { %488 = vrot.lane.b32.xlu1 %v1701_v25, %s1450_s20 }
 0x481   : > { %v1267_v7 = vpop.eup %1266 }
 0x482   : > { %v813_v9 = vsel %vm429_vm2, %v1267_v7, 0.0  ;;  %v1269_v13 = vpop.eup %1268 }
 0x483   : > { %814 = vadd.xlane.f32.xlu0 %v813_v9  ;;  %v703_v14 = vsel %vm429_vm2, %v1269_v13, 0.0 }
 0x499   : > { %599 = vrot.lane.b32.xlu0 %v1701_v25, %s1451_s30  ;;  %s1082_s30 = sshll.u32 %s1519_s28, 7  ;;  %s949_s28 = scalar_lea.sflag [#allocation4], %s1668_s12 }
 0x49a   : > { %s1778_s29 = scalar_lea.hbm %s1830_s7, %s1082_s30 }
 0x4a0   : > { %704 = vadd.xlane.f32.xlu1 %v703_v14 }
 0x4b1   : > { %709 = vrot.lane.b32.xlu1 %v1701_v25, %s1452_s9  ;;  %s320_s9 = scalar_lea.vmem [#allocation8], %s1059_s14 }
 0x4b5   : > { %819 = vrot.lane.b32.xlu1 %v1701_v25, %s1453_s21  ;;  %s962_s21 = sshll.u32 %s320_s9, 4  ;;  %s1780_s21 = int_to_ptr.vmem [resolvable:$true] %s962_s21 }
 0x4b6   : > { %s1364_s14 = scalar_lea.vmem %s1780_s21, 128  ;;  %p1371_p7 = scmp.lt.s32.totalorder %s1780_s21, %s1369_s11 }
 0x4b7   : > { %p1365_p11 = scmp.ne.s32.totalorder %s1780_s21, %s1364_s14 }
 0x4b9   : > { %p1366_p1 = pnand %p1365_p11, %p1844_p0 }
 0x4bb   : > { %p1367_p3 = pneg %p1366_p1 }
 0x4f8   : > { %v484_v15 = vpop.xlane.xlu1 %483 }
 0x4f9   : > { %1270 = vrcp.f32 %v484_v15 }
 0x4fc   : > { %v489_v16 = vpop.permute.xlu1 %488 }
 0x4fd   : > { %v495_v17 = vsel %vm493_vm3, %v489_v16, 0 }
 0x4fe   : > { %1122 = vmatpush3.bf16.msra.mxu0 %v495_v17 }
 0x4ff   : > { %1133 = vmatprep.subr.bf16.mxu0 %v1441_v8 }
 0x500   : > { %v595_v19 = vpop.xlane.xlu0 %594 }
 0x501   : > { %1272 = vrcp.f32 %v595_v19 }
 0x503   : > { %v1271_v18 = vpop.eup %1270 }
 0x504   : > { %v486_v20 = vmul.f32 %v1271_v18, %v1263_v0 }
 0x506   : > { %v487_v21 = vpack.c.bf16 %v486_v20, %v486_v20 }
 0x508   : > { %1124 = vmatmul.mubr.msk.bf16.vlgmr.msra.gmra.mrb[4].mxu0 %vm429_vm2, %v487_v21 }
 0x509   : > { %1135 = vmatprep.mubr.msk.bf16.mxu0 %vm1442_vm1, %v1441_v8 }
 0x50b   : > { %v1273_v22 = vpop.eup %1272 }
 0x50c   : > { %v597_v24 = vmul.f32 %v1273_v22, %v1265_v2 }
 0x50e   : > { %v598_v27 = vpack.c.bf16 %v597_v24, %v597_v24 }
 0x510   : > { %v815_v23 = vpop.xlane.xlu0 %814 }
 0x514   : > { %v600_v25 = vpop.permute.xlu0 %599 }
 0x515   : > { %v605_v26 = vsel %vm493_vm3, %v600_v25, 0 }
 0x516   : > { %1134 = vmatpush3.bf16.msra.mxu0 %v605_v26 }
 0x517   : > { %1145 = vmatprep.subr.bf16.mxu0 %v1441_v8 }
 0x519   : > { %1136 = vmatmul.mubr.msk.bf16.vlgmr.msra.gmra.mrb[8].mxu0 %vm429_vm2, %v598_v27 }
 0x51a   : > { %1147 = vmatprep.mubr.msk.bf16.mxu0 %vm1442_vm1, %v1441_v8 }
 0x52d   : > { %v705_v28 = vpop.xlane.xlu1 %704 }
 0x52e   : > { %1274 = vrcp.f32 %v705_v28 }
 0x52f   : > { %1276 = vrcp.f32 %v815_v23 }
 0x531   : > { %v710_v29 = vpop.permute.xlu1 %709 }
 0x532   : > { %v715_v30 = vsel %vm493_vm3, %v710_v29, 0 }
 0x533   : > { %1146 = vmatpush3.bf16.msra.mxu0 %v715_v30 }
 0x534   : > { %1157 = vmatprep.subr.bf16.mxu0 %v1441_v8 }
 0x535   : > { %v820_v33 = vpop.permute.xlu1 %819 }
 0x536   : > { %v825_v36 = vsel %vm493_vm3, %v820_v33, 0 }
 0x538   : > { %v1275_v31 = vpop.eup %1274 }
 0x539   : > { %v707_v32 = vmul.f32 %v1275_v31, %v1269_v13  ;;  %v1277_v35 = vpop.eup %1276 }
 0x53a   : > { %v817_v37 = vmul.f32 %v1277_v35, %v1267_v7 }
 0x53b   : > { %v708_v34 = vpack.c.bf16 %v707_v32, %v707_v32 }
 0x53c   : > { %v818_v38 = vpack.c.bf16 %v817_v37, %v817_v37 }
 0x53d   : > { %1148 = vmatmul.mubr.msk.bf16.vlgmr.msra.gmra.mrb[12].mxu0 %vm429_vm2, %v708_v34 }
 0x53e   : > { %1158 = vmatpush3.bf16.msra.mxu0 %v825_v36  ;;  %1159 = vmatprep.mubr.msk.bf16.mxu0 %vm1442_vm1, %v1441_v8 }
 0x545   : > { %1160 = vmatmul.mubr.msk.bf16.vlgmr.msra.gmra.mrb[16].mxu0 %vm429_vm2, %v818_v38 }
 0x5db   : > { %v531_v39 = vpop.f32.mrb[4].mxu0 }
 0x5dc   : > { %v1125_v40 = vpop.f32.mrb[5].mxu0 }
 0x5dd   : > { %v534_v41 = vpop.f32.mrb[6].mxu0 }
 0x5de   : > { %v1126_v42 = vpop.f32.mrb[7].mxu0 }
 0x5ec   : > { %v641_v43 = vpop.f32.mrb[8].mxu0 }
 0x5ed   : > { %868 = vrot.lane.b32.xlu0 %v641_v43, %s1454_s22  ;;  %v1137_v44 = vpop.f32.mrb[9].mxu0 }
 0x5ee   : > { %v644_v45 = vpop.f32.mrb[10].mxu0 }
 0x5ef   : > { %v1138_v46 = vpop.f32.mrb[11].mxu0 }
 0x610   : > { %v751_v49 = vpop.f32.mrb[12].mxu0 }
 0x611   : > { %872 = vrot.lane.b32.xlu1 %v751_v49, %s1455_s13  ;;  %v1149_v50 = vpop.f32.mrb[13].mxu0  ;;  %s1370_s13 = scalar_lea.vmem %s1369_s11, 256 }
 0x612   : > { %v754_v51 = vpop.f32.mrb[14].mxu0  ;;  %p1372_p9 = scmp.lt.s32.totalorder %s1370_s13, %s1364_s14 }
 0x613   : > { %v1150_v52 = vpop.f32.mrb[15].mxu0 }
 0x614   : > { %p1373_p12 = por %p1372_p9, %p1371_p7 }
 0x616   : > { %p1374_p2 = pnand %p1373_p12, %p1367_p3 }
 0x618   : > { %v861_v53 = vpop.f32.mrb[16].mxu0 }
 0x619   : > { %876 = vrot.lane.b32.xlu0 %v861_v53, %s1456_s18  ;;  %v1161_v54 = vpop.f32.mrb[17].mxu0 }
 0x61a   : > { %v864_v55 = vpop.f32.mrb[18].mxu0 }
 0x61b   : > { %v1162_v56 = vpop.f32.mrb[19].mxu0 }
 0x65f   : > { %v869_v57 = vpop.permute.xlu0 %868 }
 0x660   : > { %v879_v8 = vsel %vm429_vm2, %v531_v39, %v869_v57 }
 0x683   : > { %v873_v58 = vpop.permute.xlu1 %872 }
 0x684   : > { %v881_v59 = vsel %vm880_vm4, %v879_v8, %v873_v58 }
 0x68b   : > { %v877_v60 = vpop.permute.xlu0 %876 }
 0x68c   : > { %v883_v61 = vsel %vm882_vm5, %v881_v59, %v877_v60 }
 0x68d   : > { %v884_v62 = vpack.c.bf16 %v883_v61, %v883_v61 }
 0x68f   : > { %1168 = vmatmul.mubr.msk.bf16.vlgmr.msra.gmra.mrb[16].mxu1 %vm323_vm0, %v884_v62 }
 0x762   : > { %v941_v0 = vpop.f32.mrb[16].mxu1 }
 0x763   : > { %v942_v1 = vadd.f32 %v1077_v63, %v941_v0  ;;  %v1169_v2 = vpop.f32.mrb[17].mxu1 }
 0x764   : > { %v944_v3 = vpop.f32.mrb[18].mxu1 }
 0x765   : > { %v1170_v4 = vpop.f32.mrb[19].mxu1  ;;  %947 = vst.msk [vmem:[%s320_s9] sm:$0xff] %vm323_vm0, %v942_v1 }
 0x766   : > { %1377 = shalt.err (!%p1374_p2)
}
 0x767   : > { %s1378_s12 = scalar_lea.hbm %s1778_s29, 128  ;;  %s1382_s20 = scalar_lea.hbm %s1830_s7, 256 }
 0x768   : > { %p1379_p13 = scmp.ne.s32.totalorder %s1778_s29, %s1378_s12  ;;  %p1383_p4 = scmp.lt.u32.totalorder %s1778_s29, %s1830_s7 }
 0x769   : > { %p1384_p5 = scmp.lt.u32.totalorder %s1382_s20, %s1378_s12  ;;  %p1386_p11 = scmp.lt.u32.totalorder %s1378_s12, %s1778_s29 }
 0x76a   : > { %p1380_p6 = pnand %p1379_p13, %p1844_p0 }
 0x76b   : > { %p1385_p8 = por %p1384_p5, %p1383_p4 }
 0x76c   : > { %p1381_p10 = pneg %p1380_p6 }
 0x76d   : > { %p1387_p1 = por %p1386_p11, %p1385_p8 }
 0x76f   : > { %p1388_p3 = pnand %p1387_p1, %p1381_p10 }
 0x771   : > { %1391 = shalt.err (!%p1388_p3)
}
 0x772   : > { %1181 = dma.vmem_to_hbm [thread:$0]  (%p1844_p0), %s1780_s21, 128, %s1778_s29, %s949_s28  }
 0x773 PF: > { %s974_s22 = sand.u32 1, %s1422_s24   ;;  %p1845_p7 = scmp.ne.s32.totalorder %s1835_s8, 0 }
 0x774   : > { %p1846_p9 = scmp.ge.s32.totalorder %s1434_s27, 2  ;;  %s975_s23 = scalar_lea.sflag [#allocation4], %s974_s22 }
 0x776   : > { %p1195_p12 = pnand %p1846_p9, %p1845_p7 }
 0x778   : > { %1417 = dma.done.wait (!%p1195_p12), %s975_s23, 128  }
 0x779   : > { %1419 = vsyncadd (!%p1195_p12), %s975_s23, 4294967168  ;;  %p21_p2 = scmp.ge.s32.totalorder %s1609_s10, 4   ;;  %s1847_s24 = smov %s1426_s25 }
 0x77a   : > { %s1848_s25 = smov %s1430_s26  ;;  %s1849_s26 = smov %s1625_s16 }
 0x77b   : > { %s1850_s27 = smov %s1609_s10  ;;  %23 = sbr.rel (!%p21_p2) target bundleno = 6 (0x6), region = 101 }
 0x782   :  { %980 = vsyncpa [#allocation3], 1 }
 0x783   :  { %982 = vsyncpa [#allocation3 + $0x1], 1 }
 0x784   :  { %983 = vsyncpa [#allocation6], 1 }
 0x785   :  { %984 = vsyncpa [#allocation4], 1 }
 0x786   :  { %986 = vsyncpa [#allocation4 + $0x1], 1 }

</bundles_post_ra>
